<compile_context>
chip_gen: v6e
topology: v6e:2x2x1
jax: 0.10.0
libtpu: 0.0.40
codegen_flags: <defaults>
</compile_context>

<pallas_src>
import functools

import numpy as np

import jax
import jax.numpy as jnp
from jax.experimental import pallas as pl
from jax.experimental.pallas import tpu as pltpu


# ---------------------------------------------------------------------------
# VMEM budget (generation aware): v5e/v6e 128 MiB, v7x 64 MiB per TensorCore.
# Leave ~16 MiB for compiler-internal scratch, use the rest.
# ---------------------------------------------------------------------------
try:
    _VMEM_CAP = int(pltpu.get_tpu_info().vmem_capacity_bytes)
except Exception:  # conservative fallback (covers v7x's 64 MiB)
    _VMEM_CAP = 64 * 1024 * 1024

_VMEM_LIMIT = int(max(_VMEM_CAP - (16 << 20), 32 << 20))

_MAX_UNROLL = 64  # cap on planes per block (static per-plane loop length)


def _round_up(x: int, m: int) -> int:
    return (x + m - 1) // m * m


def _bicubic_matrix_np(out_size: int, in_size: int) -> np.ndarray:
    """Dense (out_size, in_size) bicubic interpolation matrix (host NumPy).

    Matches torch bicubic: align_corners=False, cubic coefficient a=-0.75,
    edge-replicate clamping (weights of clamped taps accumulate on the border).
    """
    a = -0.75

    def cubic(x):
        x = np.abs(x)
        w1 = ((a + 2.0) * x - (a + 3.0)) * x * x + 1.0            # |x| <= 1
        w2 = ((a * x - 5.0 * a) * x + 8.0 * a) * x - 4.0 * a      # 1 < |x| < 2
        return np.where(x <= 1.0, w1, np.where(x < 2.0, w2, 0.0))

    scale = in_size / out_size
    i = np.arange(out_size, dtype=np.float64)
    center = (i + 0.5) * scale - 0.5
    i0 = np.floor(center)
    offs = np.arange(-1, 3, dtype=np.float64)                     # 4 taps
    idx = i0[:, None] + offs[None, :]                             # (out, 4)
    w = cubic(center[:, None] - idx)                              # (out, 4)
    idx_c = np.clip(idx, 0, in_size - 1).astype(np.int64)         # replicate edge
    mat = np.zeros((out_size, in_size), dtype=np.float64)
    np.add.at(mat, (np.repeat(np.arange(out_size), 4), idx_c.ravel()), w.ravel())
    return mat


def _pick_pb(P: int, Hp: int, Wp: int, itemsize: int) -> int:
    """Planes per grid step, sized against VMEM, preferring divisors of P."""
    plane = Hp * Wp
    # Per-plane working set (bytes) inside one grid step:
    #   input block  (double-buffered)      : 2 * itemsize
    #   output block (double-buffered)      : 2 * itemsize
    #   bf16 copy of the input block        : 2
    #   f32 width-matmul result t           : 4
    #   bf16 copy of t                      : 2
    per_plane = plane * (2 * itemsize + 2 * itemsize + 2 + 4 + 2)
    weights = 2 * (Hp * Hp + Wp * Wp) * 2          # bf16, double-buffered
    budget = _VMEM_LIMIT - weights - (4 << 20)     # headroom for misc scratch
    pb_max = max(1, budget // per_plane)
    pb_max = min(pb_max, P, _MAX_UNROLL)

    # Prefer a pb that divides P (no ragged / wasted last block); among those,
    # prefer an even number of grid steps so v7x's two TensorCores are evenly
    # loaded (no-op on single-core v5e/v6e).
    divisors = [d for d in range(1, P + 1) if P % d == 0 and d <= pb_max]
    even_steps = [d for d in divisors if (P // d) % 2 == 0]
    if even_steps:
        return max(even_steps)
    return max(divisors) if divisors else 1


def _resize_kernel(x_ref, wh_ref, wwT_ref, o_ref, *, pb, hp):
    # x_ref / o_ref: (pb*hp, Wp) -- pb flattened planes.  wh_ref: (hp, hp).
    # wwT_ref: (Wp, Wp).  All weights bf16; accumulate in f32 on the MXU.
    # Width resize: one large-M matmul with a stationary RHS.
    x = x_ref[...].astype(jnp.bfloat16)
    t = jnp.dot(x, wwT_ref[...], preferred_element_type=jnp.float32)
    t = t.astype(jnp.bfloat16)
    wh = wh_ref[...]
    # Height resize: per-plane dot, stored straight into o_ref (no broadcast
    # of wh, no full-block f32 temporary).  pb is a static Python int.
    for i in range(pb):
        lo, hi = i * hp, (i + 1) * hp
        o_ref[lo:hi, :] = jnp.dot(
            wh, t[lo:hi, :], preferred_element_type=jnp.float32
        ).astype(o_ref.dtype)


@functools.partial(jax.jit, static_argnames=("P", "Hp"))
def _resize_planes(flat, wh_comb, wwT_comb, *, P, Hp):
    rows, Wp = flat.shape
    assert rows == P * Hp
    pb = _pick_pb(P, Hp, Wp, flat.dtype.itemsize)
    grid = (P // pb,)
    kernel = functools.partial(_resize_kernel, pb=pb, hp=Hp)
    return pl.pallas_call(
        kernel,
        out_shape=jax.ShapeDtypeStruct((P * Hp, Wp), flat.dtype),
        grid_spec=pltpu.PrefetchScalarGridSpec(
            num_scalar_prefetch=0,
            grid=grid,
            in_specs=[
                pl.BlockSpec((pb * Hp, Wp), lambda p: (p, 0)),
                # Constant block index -> DMA'd once, resident across grid.
                pl.BlockSpec((Hp, Hp), lambda p: (0, 0)),
                pl.BlockSpec((Wp, Wp), lambda p: (0, 0)),
            ],
            out_specs=pl.BlockSpec((pb * Hp, Wp), lambda p: (p, 0)),
        ),
        compiler_params=pltpu.CompilerParams(
            dimension_semantics=("parallel",),
            vmem_limit_bytes=_VMEM_LIMIT,
        ),
    )(flat, wh_comb, wwT_comb)


class RandomScaleResize:
    """JAX/Pallas port of the PyTorch RandomScaleResize module (NCHW input)."""

    def __init__(self, min_scale, image_size):
        self.min_scale = float(min_scale)
        self.image_size = tuple(int(d) for d in image_size)   # (H, W)

    def __call__(self, img, rng=None):
        # img: (N, C, H, W), any float dtype (PyTorch NCHW convention).
        N, C, H, W = img.shape
        assert (H, W) == self.image_size
        if rng is None:
            rng = np.random.default_rng()
        # Host RNG (mirrors torch.rand(1).item()); no device sync.
        u = float(rng.uniform())
        scale = self.min_scale + (1.0 - self.min_scale) * u
        scaled_h = max(1, int(H * scale))   # int() truncation, as in the spec
        scaled_w = max(1, int(W * scale))

        # Pre-composed fixed-shape resize maps (tiny host NumPy work).
        wh = _bicubic_matrix_np(H, scaled_h) @ _bicubic_matrix_np(scaled_h, H)  # (H,H)
        ww = _bicubic_matrix_np(W, scaled_w) @ _bicubic_matrix_np(scaled_w, W)  # (W,W)

        # Padding for hardware tiling: H to the 8-row sublane tile; W to a
        # full 128-lane vreg when W < 128 (lane-dense stores / MXU columns).
        Hp = _round_up(H, 8)
        Wp = _round_up(W, 128) if W < 128 else W
        wh_p = np.zeros((Hp, Hp), np.float32)
        wh_p[:H, :H] = wh
        wwT_p = np.zeros((Wp, Wp), np.float32)
        wwT_p[:W, :W] = ww.T
        wh_b = jnp.asarray(wh_p, dtype=jnp.bfloat16)
        wwT_b = jnp.asarray(wwT_p, dtype=jnp.bfloat16)

        P = N * C
        planes = img.reshape(P, H, W)
        if (Hp, Wp) != (H, W):
            planes = jnp.pad(planes, ((0, 0), (0, Hp - H), (0, Wp - W)))
        flat = planes.reshape(P * Hp, Wp)          # wrapper-side fold (free)

        out = _resize_planes(flat, wh_b, wwT_b, P=P, Hp=Hp)
        out = out.reshape(P, Hp, Wp)
        if (Hp, Wp) != (H, W):
            out = out[:, :H, :W]
        return out.reshape(N, C, H, W)


if __name__ == "__main__":
    key = jax.random.PRNGKey(0)

    N, C, H, W = 2, 4, 16, 16
    img = jax.random.normal(key, (N, C, H, W), dtype=jnp.float32)

    mod = RandomScaleResize(min_scale=0.5, image_size=(H, W))
    out = mod(img, np.random.default_rng(0))
    out = jax.block_until_ready(out)

    assert out.shape == (N, C, H, W)
    assert out.dtype == jnp.float32
    assert bool(jnp.all(jnp.isfinite(out)))
    print("KERNEL_OK")
</pallas_src>

<mosaic_0001>
module attributes {stable_mosaic.version = 11 : i64} {
  func.func @_resize_kernel(%arg0: i32, %arg1: memref<64x128xf32, #tpu.memory_space<vmem>>, %arg2: memref<16x16xbf16, #tpu.memory_space<vmem>>, %arg3: memref<128x128xbf16, #tpu.memory_space<vmem>>, %arg4: memref<64x128xf32, #tpu.memory_space<vmem>>) attributes {dimension_semantics = [#tpu.dimension_semantics<parallel>], iteration_bounds = array<i64: 2>, scalar_prefetch = 0 : i64, scratch_operands = 0 : i64, tpu.core_type = #tpu.core_type<tc>, window_params = [{transform_indices = @transform_0, window_bounds = array<i64: 64, 128>}, {pipeline_mode = #tpu.pipeline_mode<synchronous>, transform_indices = @transform_1, window_bounds = array<i64: 16, 16>}, {pipeline_mode = #tpu.pipeline_mode<synchronous>, transform_indices = @transform_2, window_bounds = array<i64: 128, 128>}, {transform_indices = @transform_3, window_bounds = array<i64: 64, 128>}]} {
    %c0 = arith.constant 0 : index
    %c0_0 = arith.constant 0 : index
    %0 = vector.load %arg1[%c0, %c0_0] : memref<64x128xf32, #tpu.memory_space<vmem>>, vector<64x128xf32>
    %1 = arith.truncf %0 : vector<64x128xf32> to vector<64x128xbf16>
    %c0_1 = arith.constant 0 : index
    %c0_2 = arith.constant 0 : index
    %2 = vector.load %arg3[%c0_1, %c0_2] : memref<128x128xbf16, #tpu.memory_space<vmem>>, vector<128x128xbf16>
    %cst = arith.constant dense<0.000000e+00> : vector<64x128xf32>
    %3 = tpu.matmul %1, %2, %cst {dimension_numbers = #tpu.dot_dimension_numbers<[1], [0], [0], [1], [0, 0, 1, 1], [], []>} : vector<64x128xbf16>, vector<128x128xbf16>, vector<64x128xf32> -> vector<64x128xf32>
    %4 = arith.truncf %3 : vector<64x128xf32> to vector<64x128xbf16>
    %c0_3 = arith.constant 0 : index
    %c0_4 = arith.constant 0 : index
    %5 = vector.load %arg2[%c0_3, %c0_4] : memref<16x16xbf16, #tpu.memory_space<vmem>>, vector<16x16xbf16>
    %6 = vector.extract_strided_slice %4 {offsets = [0, 0], sizes = [16, 128], strides = [1, 1]} : vector<64x128xbf16> to vector<16x128xbf16>
    %cst_5 = arith.constant dense<0.000000e+00> : vector<16x128xf32>
    %7 = tpu.matmul %5, %6, %cst_5 {dimension_numbers = #tpu.dot_dimension_numbers<[1], [0], [0], [1], [0, 0, 1, 1], [], []>} : vector<16x16xbf16>, vector<16x128xbf16>, vector<16x128xf32> -> vector<16x128xf32>
    %c0_6 = arith.constant 0 : index
    %c0_7 = arith.constant 0 : index
    %8 = vector.load %arg4[%c0_6, %c0_7] : memref<64x128xf32, #tpu.memory_space<vmem>>, vector<16x128xf32>
    tpu.vector_store %arg4[%c0_6, %c0_7], %7 {strides = array<i32>} : memref<64x128xf32, #tpu.memory_space<vmem>>, vector<16x128xf32>,
    %9 = vector.extract_strided_slice %4 {offsets = [16, 0], sizes = [16, 128], strides = [1, 1]} : vector<64x128xbf16> to vector<16x128xbf16>
    %cst_8 = arith.constant dense<0.000000e+00> : vector<16x128xf32>
    %10 = tpu.matmul %5, %9, %cst_8 {dimension_numbers = #tpu.dot_dimension_numbers<[1], [0], [0], [1], [0, 0, 1, 1], [], []>} : vector<16x16xbf16>, vector<16x128xbf16>, vector<16x128xf32> -> vector<16x128xf32>
    %c16 = arith.constant 16 : index
    %c0_9 = arith.constant 0 : index
    %11 = vector.load %arg4[%c16, %c0_9] : memref<64x128xf32, #tpu.memory_space<vmem>>, vector<16x128xf32>
    tpu.vector_store %arg4[%c16, %c0_9], %10 {strides = array<i32>} : memref<64x128xf32, #tpu.memory_space<vmem>>, vector<16x128xf32>,
    %12 = vector.extract_strided_slice %4 {offsets = [32, 0], sizes = [16, 128], strides = [1, 1]} : vector<64x128xbf16> to vector<16x128xbf16>
    %cst_10 = arith.constant dense<0.000000e+00> : vector<16x128xf32>
    %13 = tpu.matmul %5, %12, %cst_10 {dimension_numbers = #tpu.dot_dimension_numbers<[1], [0], [0], [1], [0, 0, 1, 1], [], []>} : vector<16x16xbf16>, vector<16x128xbf16>, vector<16x128xf32> -> vector<16x128xf32>
    %c32 = arith.constant 32 : index
    %c0_11 = arith.constant 0 : index
    %14 = vector.load %arg4[%c32, %c0_11] : memref<64x128xf32, #tpu.memory_space<vmem>>, vector<16x128xf32>
    tpu.vector_store %arg4[%c32, %c0_11], %13 {strides = array<i32>} : memref<64x128xf32, #tpu.memory_space<vmem>>, vector<16x128xf32>,
    %15 = vector.extract_strided_slice %4 {offsets = [48, 0], sizes = [16, 128], strides = [1, 1]} : vector<64x128xbf16> to vector<16x128xbf16>
    %cst_12 = arith.constant dense<0.000000e+00> : vector<16x128xf32>
    %16 = tpu.matmul %5, %15, %cst_12 {dimension_numbers = #tpu.dot_dimension_numbers<[1], [0], [0], [1], [0, 0, 1, 1], [], []>} : vector<16x16xbf16>, vector<16x128xbf16>, vector<16x128xf32> -> vector<16x128xf32>
    %c48 = arith.constant 48 : index
    %c0_13 = arith.constant 0 : index
    %17 = vector.load %arg4[%c48, %c0_13] : memref<64x128xf32, #tpu.memory_space<vmem>>, vector<16x128xf32>
    tpu.vector_store %arg4[%c48, %c0_13], %16 {strides = array<i32>} : memref<64x128xf32, #tpu.memory_space<vmem>>, vector<16x128xf32>,
    return
  }
  func.func @transform_0(%arg0: i32) -> (i32, i32) {
    %c0_i32 = arith.constant 0 : i32
    %c0_i32_0 = arith.constant 0 : i32
    return %arg0, %c0_i32 : i32, i32
  }
  func.func @transform_1(%arg0: i32) -> (i32, i32) {
    %c0_i32 = arith.constant 0 : i32
    %c0_i32_0 = arith.constant 0 : i32
    %c0_i32_1 = arith.constant 0 : i32
    return %c0_i32, %c0_i32_0 : i32, i32
  }
  func.func @transform_2(%arg0: i32) -> (i32, i32) {
    %c0_i32 = arith.constant 0 : i32
    %c0_i32_0 = arith.constant 0 : i32
    %c0_i32_1 = arith.constant 0 : i32
    return %c0_i32, %c0_i32_0 : i32, i32
  }
  func.func @transform_3(%arg0: i32) -> (i32, i32) {
    %c0_i32 = arith.constant 0 : i32
    %c0_i32_0 = arith.constant 0 : i32
    return %arg0, %c0_i32 : i32, i32
  }
}

</mosaic_0001>

<bundles_post_ra>
// kernel: _resize_planes.1
= control target key start
LH: loop header
LB: loop body
LE: loop exit
PB: predicated region body
PF: predicated region fallthrough
CT: control target
= control target key end

     0   :  { %8 = vsyncpa [#allocation3], 0  ;;  %s1232_s0 = inlined_call_operand.hbm [shape: f32[128,128], index: 0, kind: input, shape index: {}]   ;;  %s1233_s1 = inlined_call_operand.hbm [shape: bf16[16,16], index: 1, kind: input, shape index: {}]   ;;  %s1234_s2 = inlined_call_operand.hbm [shape: bf16[128,128], index: 2, kind: input, shape index: {}]   ;;  %s1235_s3 = inlined_call_operand.hbm [shape: f32[128,128], index: 3, kind: output, shape index: {}]  }
   0x1   :  { %10 = vsyncpa [#allocation3 + $0x1], 0 }
   0x2   :  { %11 = vsyncpa [#allocation6], 0 }
   0x3   :  { %12 = vsyncpa [#allocation4], 0 }
   0x4   :  { %14 = vsyncpa [#allocation4 + $0x1], 0  ;;  %s1022_s12 = smov 0   ;;  %s1024_s13 = smov 0  }
   0x5   :  { %s1026_s14 = smov 0   ;;  %s1028_s15 = smov 0  }
   0x6 LB: > { %s1043_s16 = sadd.s32 4294967295, %s988_s15   ;;  %s655_s17 = sadd.s32 4294967294, %s988_s15   ;;  %s988_s15 = sphi %s1028_s15, %s1257_s15   ;;  %s984_s14 = sphi %s1026_s14, %s1256_s14   ;;  %s980_s13 = sphi %s1024_s13, %s1255_s13   ;;  %s976_s12 = sphi %s1022_s12, %s1254_s12  }
   0x7   : > { %p40_p0 = scmp.ne.s32.totalorder %s980_s13, %s976_s12  ;;  %p1236_p1 = scmp.eq.s32.totalorder %s1043_s16, 0 }
   0x8   : > { %p112_p3 = scmp.eq.s32.totalorder %s655_s17, 1  ;;  %p656_p5 = scmp.ge.s32.totalorder %s988_s15, 1 }
   0x9   : > { %p1052_p4 = por %p1236_p1, %p40_p0  ;;  %p119_p7 = scmp.lt.s32.totalorder %s988_s15, 3 }
   0xa   : > { %p1057_p6 = por %p112_p3, %p40_p0  ;;  %s990_s21 = smov [#allocation5]  }
   0xb   : > { %s1240_s18 = scalar_select %p1052_p4, 1, 0 }
   0xc   : > { %s1241_s19 = scalar_select %p1057_p6, 1, 0 }
   0xd   : > { %p1062_p8 = pnand %p656_p5, %p119_p7  ;;  %s131_s22 = sshll.u32 %s990_s21, 4  ;;  %s132_s22 = int_to_ptr.vmem [resolvable:$true] %s131_s22 }
   0xe   : > { %s991_s24 = smov [#allocation7]   ;;  %s851_s26 = scalar_lea.vmem %s132_s22, 128 }
   0xf   : > { %s1242_s20 = scalar_select %p1062_p8, 1, 0 }
  0x10   : > { %p768_p9 = pneg %p1062_p8  ;;  %s144_s25 = sshll.u32 %s991_s24, 4  ;;  %s145_s25 = int_to_ptr.vmem [resolvable:$true] %s144_s25 }
  0x11   : > { %p852_p13 = scmp.ne.s32.totalorder %s132_s22, %s851_s26  ;;  %p859_p5 = scmp.lt.s32.totalorder %s132_s22, %s132_s22 }
  0x12   : > { %p1071_p11 = pnand %p768_p9, %p1236_p1  ;;  %p860_p7 = scmp.lt.s32.totalorder %s851_s26, %s851_s26 }
  0x14   : > { %p842_p12 = pneg %p1071_p11  ;;  %p861_p10 = por %p860_p7, %p859_p5 }
  0x16   : > { %p854_p0 = pnand %p852_p13, %p842_p12 }
  0x18   : > { %p855_p3 = pneg %p854_p0 }
  0x1a   : > { %p862_p9 = pnand %p861_p10, %p855_p3 }
  0x1c   : > { %865 = shalt.err (!%p862_p9)
}
  0x1d   : > { %s992_s27 = smov 64   ;;  %s993_s28 = smov 4  }
  0x1e   : > { %771 = dma.hbm_to_vmem [thread:$0]  (!%p1071_p11), %s1233_s1, 128, %s132_s22, [#allocation6], %s992_s27, %s992_s27, %s993_s28  }
  0x1f   : > { %s877_s4 = scalar_lea.vmem %s145_s25, 1024  ;;  %p885_p2 = scmp.lt.s32.totalorder %s145_s25, %s145_s25 }
  0x20   : > { %p878_p1 = scmp.ne.s32.totalorder %s145_s25, %s877_s4  ;;  %p886_p6 = scmp.lt.s32.totalorder %s877_s4, %s877_s4 }
  0x22   : > { %p880_p13 = pnand %p878_p1, %p842_p12  ;;  %p887_p5 = por %p886_p6, %p885_p2 }
  0x24   : > { %p881_p0 = pneg %p880_p13 }
  0x26   : > { %p888_p10 = pnand %p887_p5, %p881_p0 }
  0x28   : > { %891 = shalt.err (!%p888_p10)
}
  0x29   : > { %774 = dma.hbm_to_vmem [thread:$0]  (!%p1071_p11), %s1234_s2, 1024, %s145_s25, [#allocation6], %s992_s27, %s992_s27, %s993_s28  }
  0x2a   : > { %s1094_s7 = sadd.s32 1, %s988_s15   ;;  %s27_s8 = sadd.s32 1, %s984_s14 }
  0x2b   : > { %s24_s9 = ssub.s32 %s988_s15, %s1094_s7  ;;  %p34_p1 = scmp.ne.s32.totalorder %s984_s14, %s980_s13 }
  0x2c   : > { %p25_p2 = scmp.eq.s32.totalorder %s24_s9, 0  ;;  %p35_p6 = scmp.eq.s32.totalorder %s988_s15, 0 }
  0x2d   : > { %p1244_p12 = scmp.eq.s32.totalorder %s1043_s16, 1  ;;  %p785_p7 = scmp.lt.s32.totalorder %s988_s15, 2 }
  0x2e   : > { %s1110_s11 = scalar_select %p25_p2, %s984_s14, %s27_s8  }
  0x2f   : > { %p1104_p3 = por %p1244_p12, %p34_p1  ;;  %p36_p9 = por %p35_p6, %p34_p1 }
  0x30   : > { %s158_s17 = sand.u32 1, %s984_s14   ;;  %s686_s22 = sshll.u32 %s988_s15, 10 }
  0x31   : > { %s1245_s10 = scalar_select %p1104_p3, 1, 0 }
  0x32   : > { %s660_s21 = sshll.u32 %s158_s17, 6  ;;  %s1117_s25 = scalar_lea.hbm %s1232_s0, %s686_s22 }
  0x33   : > { %s162_s26 = scalar_lea.vmem [#allocation2], %s660_s21  ;;  %p1121_p11 = pnand %p785_p7, %p36_p9 }
  0x34   : > { %s169_s27 = sshll.u32 %s162_s26, 4  ;;  %s1125_s29 = scalar_lea.sflag [#allocation3], %s158_s17  ;;  %s1119_s27 = int_to_ptr.vmem [resolvable:$true] %s169_s27 }
  0x35   : > { %s892_s30 = scalar_lea.hbm %s1117_s25, 1024  ;;  %p894_p0 = pneg %p1121_p11 }
  0x36   : > { %p893_p13 = scmp.ne.s32.totalorder %s1117_s25, %s892_s30  ;;  %s897_s6 = scalar_lea.hbm %s1232_s0, 2048 }
  0x37   : > { %p898_p1 = scmp.lt.s32.totalorder %s1117_s25, %s1232_s0  ;;  %p899_p2 = scmp.lt.s32.totalorder %s897_s6, %s892_s30 }
  0x38   : > { %p895_p5 = pnand %p894_p0, %p893_p13 }
  0x39   : > { %p900_p6 = por %p899_p2, %p898_p1 }
  0x3a   : > { %p896_p10 = pneg %p895_p5 }
  0x3c   : > { %p901_p12 = pnand %p900_p6, %p896_p10 }
  0x3e   : > { %904 = shalt.err (!%p901_p12)
}
  0x3f   : > { %s905_s17 = scalar_lea.vmem %s1119_s27, 1024  ;;  %s994_s21 = smov [#allocation2]  }
  0x40   : > { %p906_p7 = scmp.ne.s32.totalorder %s1119_s27, %s905_s17  ;;  %s910_s22 = sshll.u32 %s994_s21, 4  ;;  %s911_s22 = int_to_ptr.vmem [resolvable:$false] %s910_s22 }
  0x41   : > { %s912_s23 = scalar_lea.vmem %s911_s22, 2048  ;;  %p913_p5 = scmp.lt.s32.totalorder %s1119_s27, %s911_s22 }
  0x42   : > { %p908_p9 = pnand %p906_p7, %p894_p0  ;;  %p914_p3 = scmp.lt.s32.totalorder %s912_s23, %s905_s17 }
  0x44   : > { %p909_p13 = pneg %p908_p9  ;;  %p915_p4 = por %p914_p3, %p913_p5 }
  0x46   : > { %p916_p8 = pnand %p915_p4, %p909_p13 }
  0x48   : > { %919 = shalt.err (!%p916_p8)
}
  0x49   : > { %s995_s24 = smov 128   ;;  %s996_s26 = smov 8  }
  0x4a   : > { %778 = dma.hbm_to_vmem [thread:$0]  (!%p1121_p11), %s1117_s25, 1024, %s1119_s27, %s1125_s29, %s995_s24, %s995_s24, %s996_s26  }
  0x4b   : > { %p1247_p0 = scmp.ne.s32.totalorder %s1242_s20, 0 }
  0x4c   : > { %s1149_s30 = sand.u32 (!%p1247_p0), 1, %s980_s13   ;;  %p1248_p4 = scmp.ne.s32.totalorder (!%p1247_p0), %s1240_s18, 0 }
  0x4d   : > { %181 = sbr.rel (%p1247_p0) target bundleno = 559 (0x22f), region = 32  ;;  %s664_s4 = sshll.u32 (!%p1247_p0), %s1149_s30, 6 }
  0x4e   : > { %s184_s5 = scalar_lea.sflag (!%p1247_p0), [#allocation3], %s1149_s30  ;;  %s1155_s6 = scalar_lea.vmem (!%p1247_p0), [#allocation2], %s664_s4 }
  0x52   : > { %963 = dma.done.wait (%p1248_p4), %s184_s5, 1024  }
  0x53   : > { %965 = vsyncadd (%p1248_p4), %s184_s5, 4294966272  ;;  %p1249_p8 = scmp.eq.s32.totalorder %s1043_s16, 0 }
  0x55   : > { %967 = dma.done.wait (%p1249_p8), [#allocation6], 1152   ;;  %p1250_p3 = pmov %p1249_p8 }
  0x56   : > { %v831_v0 = vld [vmem:[#allocation7 + $0x38] sm:$0xff]   ;;  %v832_v1 = vld [vmem:[#allocation7 + $0x30] sm:$0xff]   ;;  %v833_v2 = vld [vmem:[#allocation7 + $0x28] sm:$0xff]   ;;  %v997_v20 = vmov 0.0   ;;  %vm998_vm0 = vmmov 0   ;;  %vm373_vm1 = vcmask 130048  }
  0x57   : > { %969 = vsyncadd (%p1250_p3), [#allocation6], 4294966144  ;;  %708 = vmatprep.subr.bf16.mxu0 %v831_v0  ;;  %v834_v3 = vld [vmem:[#allocation7 + $0x20] sm:$0xff]   ;;  %v221_v4 = vld [vmem:[%s1155_s6] sm:$0xff]  ;;  %732 = vmatprep.subr.bf16.mxu1 %v997_v20  ;;  %s217_s18 = scalar_lea.vmem [#allocation8], %s664_s4  ;;  %s687_s25 = sshll.u32 %s1043_s16, 10 }
  0x58   : > { %709 = vmatpush3.bf16.msra.mxu0 %v831_v0  ;;  %v222_v5 = vld [vmem:[%s1155_s6 + $0x8] sm:$0xff]  ;;  %v835_v7 = vld [vmem:[#allocation7 + $0x18] sm:$0xff]   ;;  %v836_v8 = vld [vmem:[#allocation7 + $0x10] sm:$0xff]   ;;  %734 = vmatprep.mubr.msk.bf16.mxu1 %vm998_vm0, %v997_v20  ;;  %s563_s20 = sshll.u32 %s217_s18, 4  ;;  %s1189_s29 = scalar_lea.hbm %s1235_s3, %s687_s25  ;;  %s1184_s20 = int_to_ptr.vmem [resolvable:$true] %s563_s20 }
  0x59   : > { %710 = vmatprep.subr.bf16.mxu0 %v832_v1  ;;  %v229_v6 = vpack.c.bf16 %v222_v5, %v221_v4  ;;  %v837_v9 = vld [vmem:[#allocation7 + $0x8] sm:$0xff]   ;;  %v838_v10 = vld [vmem:[#allocation7] sm:$0xff]   ;;  %v224_v12 = vld [vmem:[%s1155_s6 + $0x18] sm:$0xff]  ;;  %s550_s8 = scalar_lea.sflag [#allocation4], %s1149_s30  ;;  %s920_s9 = scalar_lea.vmem %s1184_s20, 1024 }
  0x5a   : > { %v223_v11 = vld [vmem:[%s1155_s6 + $0x10] sm:$0xff]  ;;  %v225_v13 = vld [vmem:[%s1155_s6 + $0x20] sm:$0xff]  ;;  %v226_v14 = vld [vmem:[%s1155_s6 + $0x28] sm:$0xff]  ;;  %p921_p11 = scmp.ne.s32.totalorder %s1184_s20, %s920_s9  ;;  %p1251_p10 = scmp.ne.s32.totalorder %s1245_s10, 0 }
  0x5b   : > { %724 = vmatprep.mubr.bf16.mxu0 %v229_v6  ;;  %v230_v15 = vpack.c.bf16 %v224_v12, %v223_v11  ;;  %v231_v16 = vpack.c.bf16 %v226_v14, %v225_v13  ;;  %v227_v17 = vld [vmem:[%s1155_s6 + $0x30] sm:$0xff]  ;;  %v228_v18 = vld [vmem:[%s1155_s6 + $0x38] sm:$0xff]  ;;  %v839_v27 = vld [vmem:[#allocation5] sm:$0xff]   ;;  %s999_s16 = smov [#allocation8]  }
  0x5c   : > { %711 = vmatpush3.bf16.msra.mxu0 %v832_v1  ;;  %v232_v19 = vpack.c.bf16 %v228_v18, %v227_v17  ;;  %p922_p1 = pnand %p921_p11, %p1251_p10  ;;  %s924_s17 = sshll.u32 %s999_s16, 4  ;;  %s925_s17 = int_to_ptr.vmem [resolvable:$false] %s924_s17 }
  0x5d   : > { %712 = vmatprep.subr.bf16.mxu0 %v833_v2  ;;  %s926_s21 = scalar_lea.vmem %s925_s17, 2048  ;;  %p927_p6 = scmp.lt.s32.totalorder %s1184_s20, %s925_s17 }
  0x5e   : > { %p923_p2 = pneg %p922_p1  ;;  %p928_p12 = scmp.lt.s32.totalorder %s926_s21, %s920_s9 }
  0x60   : > { %713 = vmatpush3.bf16.msra.mxu0 %v833_v2  ;;  %p929_p7 = por %p928_p12, %p927_p6 }
  0x61   : > { %714 = vmatprep.subr.bf16.mxu0 %v834_v3 }
  0x62   : > { %p930_p9 = pnand %p929_p7, %p923_p2 }
  0x64   : > { %715 = vmatpush3.bf16.msra.mxu0 %v834_v3 }
  0x65   : > { %716 = vmatprep.subr.bf16.mxu0 %v835_v7 }
  0x68   : > { %717 = vmatpush3.bf16.msra.mxu0 %v835_v7 }
  0x69   : > { %718 = vmatprep.subr.bf16.mxu0 %v836_v8 }
  0x6c   : > { %719 = vmatpush3.bf16.msra.mxu0 %v836_v8 }
  0x6d   : > { %720 = vmatprep.subr.bf16.mxu0 %v837_v9 }
  0x70   : > { %721 = vmatpush3.bf16.msra.mxu0 %v837_v9 }
  0x71   : > { %722 = vmatprep.subr.bf16.mxu0 %v838_v10 }
  0x74   : > { %723 = vmatpush3.bf16.msra.mxu0 %v838_v10 }
  0x77   : > { %725 = vmatmul.mubr.bf16.vlgmr.msra.gmra.mxu0 %v230_v15 }
  0x78   : > { %728 = vmatprep.mubr.bf16.mxu0 %v231_v16 }
  0x7f   : > { %729 = vmatmul.mubr.bf16.gmra.mxu0 %v232_v19 }
 0x137   : > { %v726_v21 = vpop.f32.mrf.mxu0 }
 0x139   : > { %v331_v22 = vpop.f32.mrf.mxu0 }
 0x13b   : > { %v727_v23 = vpop.f32.mrf.mxu0 }
 0x13c   : > { %v363_v29 = vpack.c.bf16 %v727_v23, %v726_v21 }
 0x13d   : > { %v334_v24 = vpop.f32.mrf.mxu0 }
 0x13e   : > { %v362_v25 = vpack.c.bf16 %v334_v24, %v331_v22 }
 0x13f   : > { %v730_v26 = vpop.f32.mrf.mxu0 }
 0x140   : > { %733 = vmatpush3.bf16.msra.mxu1 %v362_v25 }
 0x141   : > { %v347_v28 = vpop.f32.mrf.mxu0  ;;  %738 = vmatprep.subr.bf16.mxu1 %v997_v20 }
 0x143   : > { %v731_v30 = vpop.f32.mrf.mxu0  ;;  %735 = vmatmul.mubr.msk.bf16.vlgmr.msra.gmra.mxu1 %vm373_vm1, %v839_v27 }
 0x144   : > { %739 = vmatpush3.bf16.msra.mxu1 %v363_v29  ;;  %740 = vmatprep.mubr.msk.bf16.mxu1 %vm998_vm0, %v997_v20  ;;  %v365_v33 = vpack.c.bf16 %v731_v30, %v730_v26 }
 0x145   : > { %v350_v31 = vpop.f32.mrf.mxu0  ;;  %744 = vmatprep.subr.bf16.mxu1 %v997_v20 }
 0x146   : > { %v364_v32 = vpack.c.bf16 %v350_v31, %v347_v28 }
 0x14b   : > { %741 = vmatmul.mubr.msk.bf16.vlgmr.msra.gmra.mxu1 %vm373_vm1, %v839_v27 }
 0x14c   : > { %745 = vmatpush3.bf16.msra.mxu1 %v364_v32  ;;  %746 = vmatprep.mubr.msk.bf16.mxu1 %vm998_vm0, %v997_v20 }
 0x14d   : > { %750 = vmatprep.subr.bf16.mxu1 %v997_v20 }
 0x153   : > { %747 = vmatmul.mubr.msk.bf16.vlgmr.msra.gmra.mxu1 %vm373_vm1, %v839_v27 }
 0x154   : > { %751 = vmatpush3.bf16.msra.mxu1 %v365_v33  ;;  %752 = vmatprep.mubr.msk.bf16.mxu1 %vm998_vm0, %v997_v20 }
 0x15b   : > { %753 = vmatmul.mubr.msk.bf16.vlgmr.msra.gmra.mxu1 %vm373_vm1, %v839_v27 }
 0x203   : > { %v411_v34 = vpop.f32.mrf.mxu1 }
 0x204   : > { %418 = vst [vmem:[%s217_s18] sm:$0xff] %v411_v34 }
 0x205   : > { %v736_v35 = vpop.f32.mrf.mxu1 }
 0x207   : > { %v414_v36 = vpop.f32.mrf.mxu1 }
 0x208   : > { %419 = vst [vmem:[%s217_s18 + $0x8] sm:$0xff] %v414_v36 }
 0x209   : > { %v737_v37 = vpop.f32.mrf.mxu1 }
 0x20b   : > { %v454_v38 = vpop.f32.mrf.mxu1 }
 0x20c   : > { %461 = vst [vmem:[%s217_s18 + $0x10] sm:$0xff] %v454_v38 }
 0x20d   : > { %v742_v39 = vpop.f32.mrf.mxu1 }
 0x20f   : > { %v457_v40 = vpop.f32.mrf.mxu1 }
 0x210   : > { %462 = vst [vmem:[%s217_s18 + $0x18] sm:$0xff] %v457_v40 }
 0x211   : > { %v743_v41 = vpop.f32.mrf.mxu1 }
 0x213   : > { %v497_v42 = vpop.f32.mrf.mxu1 }
 0x214   : > { %504 = vst [vmem:[%s217_s18 + $0x20] sm:$0xff] %v497_v42 }
 0x215   : > { %v748_v43 = vpop.f32.mrf.mxu1 }
 0x217   : > { %v500_v44 = vpop.f32.mrf.mxu1 }
 0x218   : > { %505 = vst [vmem:[%s217_s18 + $0x28] sm:$0xff] %v500_v44 }
 0x219   : > { %v749_v45 = vpop.f32.mrf.mxu1 }
 0x21b   : > { %v540_v46 = vpop.f32.mrf.mxu1 }
 0x21c   : > { %547 = vst [vmem:[%s217_s18 + $0x30] sm:$0xff] %v540_v46 }
 0x21d   : > { %v754_v47 = vpop.f32.mrf.mxu1 }
 0x21f   : > { %v543_v48 = vpop.f32.mrf.mxu1 }
 0x220   : > { %548 = vst [vmem:[%s217_s18 + $0x38] sm:$0xff] %v543_v48 }
 0x221   : > { %v755_v49 = vpop.f32.mrf.mxu1 }
 0x222   : > { %933 = shalt.err (!%p930_p9)
}
 0x223   : > { %s934_s22 = scalar_lea.hbm %s1189_s29, 1024  ;;  %s938_s26 = scalar_lea.hbm %s1235_s3, 2048 }
 0x224   : > { %p935_p13 = scmp.ne.s32.totalorder %s1189_s29, %s934_s22  ;;  %p939_p4 = scmp.lt.s32.totalorder %s1189_s29, %s1235_s3 }
 0x225   : > { %p940_p8 = scmp.lt.s32.totalorder %s938_s26, %s934_s22 }
 0x226   : > { %p936_p5 = pnand %p935_p13, %p1251_p10 }
 0x227   : > { %p941_p3 = por %p940_p8, %p939_p4 }
 0x228   : > { %p937_p0 = pneg %p936_p5 }
 0x22a   : > { %p942_p11 = pnand %p941_p3, %p937_p0 }
 0x22c   : > { %945 = shalt.err (!%p942_p11)
}
 0x22d   : > { %s1000_s6 = smov 128   ;;  %s1001_s18 = smov 8  }
 0x22e   : > { %766 = dma.vmem_to_hbm [thread:$0]  (%p1251_p10), %s1184_s20, 1024, %s1189_s29, %s550_s8, %s1000_s6, %s1000_s6, %s1001_s18  }
 0x22f PF: > { %s578_s25 = sand.u32 1, %s976_s12   ;;  %p1252_p1 = scmp.ne.s32.totalorder %s1241_s19, 0 }
 0x230   : > { %p1253_p2 = scmp.ge.s32.totalorder %s988_s15, 2  ;;  %s579_s27 = scalar_lea.sflag [#allocation4], %s578_s25 }
 0x232   : > { %p780_p6 = pnand %p1253_p2, %p1252_p1 }
 0x234   : > { %p781_p12 = pneg %p780_p6 }
 0x236   : > { %971 = dma.done.wait (%p781_p12), %s579_s27, 1024  }
 0x237   : > { %973 = vsyncadd (%p781_p12), %s579_s27, 4294966272  ;;  %p17_p7 = scmp.ge.s32.totalorder %s1094_s7, 4   ;;  %s1254_s12 = smov %s980_s13 }
 0x238   : > { %s1255_s13 = smov %s984_s14  ;;  %s1256_s14 = smov %s1110_s11 }
 0x239   : > { %s1257_s15 = smov %s1094_s7  ;;  %19 = sbr.rel (!%p17_p7) target bundleno = 6 (0x6), region = 85 }
 0x23e   :  { %584 = vsyncpa [#allocation3], 1 }
 0x23f   :  { %586 = vsyncpa [#allocation3 + $0x1], 1 }
 0x240   :  { %587 = vsyncpa [#allocation6], 1 }
 0x241   :  { %588 = vsyncpa [#allocation4], 1 }
 0x242   :  { %590 = vsyncpa [#allocation4 + $0x1], 1 }

</bundles_post_ra>
